<compile_context>
chip_gen: v6e
topology: v6e:2x2x1
jax: 0.10.0
libtpu: 0.0.40
codegen_flags: <defaults>
</compile_context>

<pallas_src>
import functools

import jax
import jax.numpy as jnp
import numpy as np
from jax.experimental import pallas as pl
from jax.experimental.pallas import tpu as pltpu


def get_quantized_range(bitwidth):
    quantized_max = (1 << (bitwidth - 1)) - 1
    quantized_min = -(1 << (bitwidth - 1))
    return quantized_min, quantized_max


def _tpu_generation():
    try:
        kind = jax.devices()[0].device_kind.lower()
    except Exception:
        return "unknown"
    if "v7" in kind or "tpu7" in kind:
        return "v7x"
    if "v6" in kind:
        return "v6e"
    if "v5" in kind:
        return "v5e"
    return "other"


def _pick_tile(dim, candidates):
    for c in candidates:
        if dim % c == 0:
            return c
    return dim  # fall back to the full extent (always a legal block shape)


def _qlinear_kernel(x_ref, w_ref, bias2_ref, scale_ref, out_ref, acc_ref, *,
                    use_int_mxu, output_zero_point, qmin, qmax):
    k = pl.program_id(2)

    @pl.when(k == 0)
    def _():
        acc_ref[...] = jnp.zeros_like(acc_ref)

    if use_int_mxu:
        # int8 x int8 -> int32 MXU accumulation (v5e/v6e): bit-exact.
        acc_ref[...] += jnp.dot(x_ref[...], w_ref[...],
                                preferred_element_type=jnp.int32)
    else:
        # v7x (no integer MXU): bf16 represents int8 exactly; with tk <= 1024
        # each per-step partial sum is <= 1024*128*128 = 2^24, so the f32 dot
        # and the f32 -> int32 cast are exact. int32 accumulation then makes
        # this path bit-exact vs the integer reference for arbitrary K.
        # TODO(synk): when clearly VALU-bound (tiny tm / batch-1) pre-cast the
        # [K, O] weight to bf16 in the wrapper to move the per-step cast off
        # the hot path (doubles W HBM bytes, so only when W is read once).
        part = jnp.dot(x_ref[...].astype(jnp.bfloat16),
                       w_ref[...].astype(jnp.bfloat16),
                       preferred_element_type=jnp.float32)
        acc_ref[...] += part.astype(jnp.int32)

    @pl.when(k == pl.num_programs(2) - 1)
    def _():
        # bias2 = 2*bias, pre-folded in the wrapper (the PyTorch reference adds
        # the bias twice: once in F.linear and once explicitly).
        acc = (acc_ref[...] + bias2_ref[...]).astype(jnp.float32)
        out = acc * scale_ref[...] + jnp.float32(output_zero_point)
        out = jnp.clip(jnp.round(out), jnp.float32(qmin), jnp.float32(qmax))
        out_ref[...] = out.astype(jnp.int8)


def quantized_linear_pallas(x, weight, bias, input_zero_point, output_zero_point,
                            input_scale, weight_scale, output_scale,
                            feature_bitwidth=8, weight_bitwidth=8,
                            tm=None, tn=None, tk=None,
                            use_int_mxu=None, buffer_count=None):
    """x: int8 [N, K]; weight: int8 [O, K]; bias: int32 [O];
    weight_scale: float32 [O]. Returns int8 [N, O]."""
    del input_zero_point, weight_bitwidth  # unused in the reference forward math
    N, K = x.shape
    O, K2 = weight.shape
    assert K == K2
    qmin, qmax = get_quantized_range(feature_bitwidth)

    gen = _tpu_generation()
    if use_int_mxu is None:
        # Explicitly overridable; auto-detection is only a default (review: avoid
        # a silent 2x-class regression from device-kind sniffing going wrong).
        use_int_mxu = gen != "v7x"

    # Pad N up to the int8 sublane pack (32): keeps layouts native, output
    # stores unmasked, and the MXU rows filled. Sliced off after the call.
    SUBLANE_PACK = 32
    n_pad = (-N) % SUBLANE_PACK
    if n_pad:
        x = jnp.pad(x, ((0, n_pad), (0, 0)))
    N_pad = N + n_pad

    # Generation-aware tile selection: biggest aligned divisor (VMEM is far from
    # binding even at 1024/1024/2048); tk capped at 1024 on the bf16 (v7x) path
    # so the f32 per-step dot stays exact.
    tm = tm or _pick_tile(N_pad, (1024, 512, 256, 128, 64, 32))
    tn = tn or _pick_tile(O, (1024, 512, 256, 128))
    if tk is None:
        tk_cands = (2048, 1024, 512, 256, 128) if use_int_mxu else (1024, 512, 256, 128)
        tk = _pick_tile(K, tk_cands)
    if not use_int_mxu:
        assert tk <= 1024, "tk must be <= 1024 on the bf16/f32 (v7x) path for exactness"
    assert N_pad % tm == 0 and O % tn == 0 and K % tk == 0

    # v7x has 2 TensorCores: guarantee >= 2 parallel grid points so both are used.
    if gen == "v7x":
        while (N_pad // tm) * (O // tn) < 2:
            if tn % 256 == 0:
                tn //= 2
            elif tm % 64 == 0:
                tm //= 2
            else:
                break

    # Weights are static in a deployed model: the [K, O] transpose should happen
    # once at load time; done here because this wrapper takes the [O, K] buffer.
    weight_t = weight.T                                          # [K, O]
    bias2d = (2 * bias.astype(jnp.int32)).reshape(1, O)          # exact int32 pre-fold
    scale2d = (jnp.float32(input_scale) * weight_scale.astype(jnp.float32)
               ).reshape(1, O) / jnp.float32(output_scale)       # same f32 op order as ref

    # VMEM limit computed from the actual tile footprint (double-buffered inputs
    # and output + accumulator), with headroom; capped at 48 MiB (safe on v7x's
    # 64 MiB and tiny relative to v5e/v6e's 128 MiB).
    need = (2 * (tm * tk            # x tile, int8
                 + tk * tn          # W tile, int8
                 + tm * tn          # out tile, int8
                 + 2 * tn * 4)      # bias2 + scale tiles
            + tm * tn * 4)          # int32 accumulator scratch
    vmem_limit = int(min(48 << 20, max(32 << 20, 2 * need + (16 << 20))))

    kernel = functools.partial(
        _qlinear_kernel,
        use_int_mxu=use_int_mxu,
        output_zero_point=float(output_zero_point),
        qmin=float(qmin), qmax=float(qmax),
    )

    x_kwargs = {}
    w_kwargs = {}
    if buffer_count is not None:   # pipeline-depth sweep knob (default 2-deep)
        x_kwargs["pipeline_mode"] = pl.Buffered(buffer_count)
        w_kwargs["pipeline_mode"] = pl.Buffered(buffer_count)

    grid = (N_pad // tm, O // tn, K // tk)
    out = pl.pallas_call(
        kernel,
        out_shape=jax.ShapeDtypeStruct((N_pad, O), jnp.int8),
        grid_spec=pltpu.PrefetchScalarGridSpec(
            num_scalar_prefetch=0,
            grid=grid,
            in_specs=[
                pl.BlockSpec((tm, tk), lambda i, j, k: (i, k), **x_kwargs),  # x   [N, K]
                pl.BlockSpec((tk, tn), lambda i, j, k: (k, j), **w_kwargs),  # W.T [K, O]
                pl.BlockSpec((1, tn), lambda i, j, k: (0, j)),               # 2*bias [1, O]
                pl.BlockSpec((1, tn), lambda i, j, k: (0, j)),               # scale  [1, O]
            ],
            out_specs=pl.BlockSpec((tm, tn), lambda i, j, k: (i, j)),
            scratch_shapes=[pltpu.VMEM((tm, tn), jnp.int32)],
        ),
        compiler_params=pltpu.CompilerParams(
            dimension_semantics=("parallel", "parallel", "arbitrary"),
            vmem_limit_bytes=vmem_limit,
        ),
    )(x, weight_t, bias2d, scale2d)

    return out[:N] if n_pad else out


def _reference_numpy(x, weight, bias, output_zero_point, input_scale,
                     weight_scale, output_scale, qmin, qmax):
    acc = x.astype(np.int64) @ weight.astype(np.int64).T + bias.astype(np.int64)
    out = (acc + bias.astype(np.int64)).astype(np.float32)
    out = out * (input_scale * weight_scale.reshape(1, -1) / output_scale)
    out = out + output_zero_point
    out = np.clip(np.rint(out), qmin, qmax).astype(np.int8)
    return out


if __name__ == "__main__":
    # Small synthetic shapes: batch=16, in_features=256, out_features=256.
    # N=16 exercises the sublane padding path; tn=tk=128 force a multi-tile
    # O/K grid so the accumulator init / finalize paths are exercised.
    N, K, O = 16, 256, 256
    key = jax.random.PRNGKey(0)
    kx, kw, kb, ks = jax.random.split(key, 4)

    x = jax.random.randint(kx, (N, K), -128, 128, dtype=jnp.int32).astype(jnp.int8)
    weight = jax.random.randint(kw, (O, K), -128, 128, dtype=jnp.int32).astype(jnp.int8)
    bias = jax.random.randint(kb, (O,), -256, 256, dtype=jnp.int32)
    weight_scale = jax.random.uniform(ks, (O,), jnp.float32, 0.01, 0.05)

    input_zero_point = 3
    output_zero_point = -5
    input_scale = 0.02
    output_scale = 0.5

    out = quantized_linear_pallas(
        x, weight, bias, input_zero_point, output_zero_point,
        input_scale, weight_scale, output_scale,
        feature_bitwidth=8, weight_bitwidth=8,
        tn=128, tk=128,
    )
    out = jax.block_until_ready(out)

    qmin, qmax = get_quantized_range(8)
    ref = _reference_numpy(
        np.asarray(x), np.asarray(weight), np.asarray(bias),
        output_zero_point, input_scale, np.asarray(weight_scale), output_scale,
        qmin, qmax,
    )
    np.testing.assert_array_equal(np.asarray(out), ref)

    print("KERNEL_OK")
</pallas_src>

<mosaic_0001>
module attributes {stable_mosaic.version = 11 : i64} {
  func.func @_qlinear_kernel(%arg0: i32, %arg1: i32, %arg2: i32, %arg3: memref<32x128xi8, #tpu.memory_space<vmem>>, %arg4: memref<128x128xi8, #tpu.memory_space<vmem>>, %arg5: memref<1x128xi32, #tpu.memory_space<vmem>>, %arg6: memref<1x128xf32, #tpu.memory_space<vmem>>, %arg7: memref<32x128xi8, #tpu.memory_space<vmem>>, %arg8: memref<32x128xi32, #tpu.memory_space<vmem>>) attributes {dimension_semantics = [#tpu.dimension_semantics<parallel>, #tpu.dimension_semantics<parallel>, #tpu.dimension_semantics<arbitrary>], iteration_bounds = array<i64: 1, 2, 2>, scalar_prefetch = 0 : i64, scratch_operands = 1 : i64, tpu.core_type = #tpu.core_type<tc>, window_params = [{transform_indices = @transform_0, window_bounds = array<i64: 32, 128>}, {transform_indices = @transform_1, window_bounds = array<i64: 128, 128>}, {transform_indices = @transform_2, window_bounds = array<i64: 1, 128>}, {transform_indices = @transform_3, window_bounds = array<i64: 1, 128>}, {transform_indices = @transform_4, window_bounds = array<i64: 32, 128>}]} {
    %c0_i32 = arith.constant 0 : i32
    %0 = arith.cmpi eq, %arg2, %c0_i32 : i32
    %1 = arith.extui %0 : i1 to i32
    %c0_i32_0 = arith.constant 0 : i32
    %2 = arith.cmpi ne, %1, %c0_i32_0 : i32
    scf.if %2 {
      %c0_i32_9 = arith.constant 0 : i32
      %12 = vector.broadcast %c0_i32_9 : i32 to vector<32x128xi32>
      %c0_10 = arith.constant 0 : index
      %c0_11 = arith.constant 0 : index
      %13 = vector.load %arg8[%c0_10, %c0_11] : memref<32x128xi32, #tpu.memory_space<vmem>>, vector<32x128xi32>
      tpu.vector_store %arg8[%c0_10, %c0_11], %12 {strides = array<i32>} : memref<32x128xi32, #tpu.memory_space<vmem>>, vector<32x128xi32>,
    } else {
    }
    %c0 = arith.constant 0 : index
    %c0_1 = arith.constant 0 : index
    %3 = vector.load %arg8[%c0, %c0_1] : memref<32x128xi32, #tpu.memory_space<vmem>>, vector<32x128xi32>
    %c0_2 = arith.constant 0 : index
    %c0_3 = arith.constant 0 : index
    %4 = vector.load %arg3[%c0_2, %c0_3] : memref<32x128xi8, #tpu.memory_space<vmem>>, vector<32x128xi8>
    %c0_4 = arith.constant 0 : index
    %c0_5 = arith.constant 0 : index
    %5 = vector.load %arg4[%c0_4, %c0_5] : memref<128x128xi8, #tpu.memory_space<vmem>>, vector<128x128xi8>
    %cst = arith.constant dense<0> : vector<32x128xi32>
    %6 = tpu.matmul %4, %5, %cst {dimension_numbers = #tpu.dot_dimension_numbers<[1], [0], [0], [1], [0, 0, 1, 1], [], []>} : vector<32x128xi8>, vector<128x128xi8>, vector<32x128xi32> -> vector<32x128xi32>
    %7 = arith.addi %3, %6 : vector<32x128xi32>
    %c0_6 = arith.constant 0 : index
    %c0_7 = arith.constant 0 : index
    %8 = vector.load %arg8[%c0_6, %c0_7] : memref<32x128xi32, #tpu.memory_space<vmem>>, vector<32x128xi32>
    tpu.vector_store %arg8[%c0_6, %c0_7], %7 {strides = array<i32>} : memref<32x128xi32, #tpu.memory_space<vmem>>, vector<32x128xi32>,
    %c1_i32 = arith.constant 1 : i32
    %9 = arith.cmpi eq, %arg2, %c1_i32 : i32
    %10 = arith.extui %9 : i1 to i32
    %c0_i32_8 = arith.constant 0 : i32
    %11 = arith.cmpi ne, %10, %c0_i32_8 : i32
    scf.if %11 {
      %c0_9 = arith.constant 0 : index
      %c0_10 = arith.constant 0 : index
      %12 = vector.load %arg8[%c0_9, %c0_10] : memref<32x128xi32, #tpu.memory_space<vmem>>, vector<32x128xi32>
      %c0_11 = arith.constant 0 : index
      %c0_12 = arith.constant 0 : index
      %13 = vector.load %arg5[%c0_11, %c0_12] : memref<1x128xi32, #tpu.memory_space<vmem>>, vector<1x128xi32>
      %14 = vector.broadcast %13 : vector<1x128xi32> to vector<32x128xi32>
      %15 = arith.addi %12, %14 : vector<32x128xi32>
      %16 = arith.sitofp %15 : vector<32x128xi32> to vector<32x128xf32>
      %c0_13 = arith.constant 0 : index
      %c0_14 = arith.constant 0 : index
      %17 = vector.load %arg6[%c0_13, %c0_14] : memref<1x128xf32, #tpu.memory_space<vmem>>, vector<1x128xf32>
      %18 = vector.broadcast %17 : vector<1x128xf32> to vector<32x128xf32>
      %19 = arith.mulf %16, %18 : vector<32x128xf32>
      %cst_15 = arith.constant -5.000000e+00 : f32
      %20 = vector.broadcast %cst_15 : f32 to vector<32x128xf32>
      %21 = arith.addf %19, %20 : vector<32x128xf32>
      %22 = math.roundeven %21 : vector<32x128xf32>
      %cst_16 = arith.constant -1.280000e+02 : f32
      %cst_17 = arith.constant 1.270000e+02 : f32
      %23 = vector.broadcast %cst_16 : f32 to vector<32x128xf32>
      %24 = arith.maximumf %23, %22 : vector<32x128xf32>
      %25 = vector.broadcast %cst_17 : f32 to vector<32x128xf32>
      %26 = arith.minimumf %25, %24 : vector<32x128xf32>
      %27 = arith.fptosi %26 : vector<32x128xf32> to vector<32x128xi8>
      %c0_18 = arith.constant 0 : index
      %c0_19 = arith.constant 0 : index
      %28 = vector.load %arg7[%c0_18, %c0_19] : memref<32x128xi8, #tpu.memory_space<vmem>>, vector<32x128xi8>
      tpu.vector_store %arg7[%c0_18, %c0_19], %27 {strides = array<i32>} : memref<32x128xi8, #tpu.memory_space<vmem>>, vector<32x128xi8>,
    } else {
    }
    return
  }
  func.func @transform_0(%arg0: i32, %arg1: i32, %arg2: i32) -> (i32, i32) {
    %c0_i32 = arith.constant 0 : i32
    return %arg0, %arg2 : i32, i32
  }
  func.func @transform_1(%arg0: i32, %arg1: i32, %arg2: i32) -> (i32, i32) {
    %c0_i32 = arith.constant 0 : i32
    return %arg2, %arg1 : i32, i32
  }
  func.func @transform_2(%arg0: i32, %arg1: i32, %arg2: i32) -> (i32, i32) {
    %c0_i32 = arith.constant 0 : i32
    %c0_i32_0 = arith.constant 0 : i32
    return %c0_i32, %arg1 : i32, i32
  }
  func.func @transform_3(%arg0: i32, %arg1: i32, %arg2: i32) -> (i32, i32) {
    %c0_i32 = arith.constant 0 : i32
    %c0_i32_0 = arith.constant 0 : i32
    return %c0_i32, %arg1 : i32, i32
  }
  func.func @transform_4(%arg0: i32, %arg1: i32, %arg2: i32) -> (i32, i32) {
    %c0_i32 = arith.constant 0 : i32
    return %arg0, %arg1 : i32, i32
  }
}

</mosaic_0001>

<bundles_post_ra>
// kernel: tpu_custom_call.1
= control target key start
LH: loop header
LB: loop body
LE: loop exit
PB: predicated region body
PF: predicated region fallthrough
CT: control target
= control target key end

     0   :  { %s1336_s0 = inlined_call_operand.hbm [shape: s8[32,256], index: 0, kind: input, shape index: {}]   ;;  %s1337_s1 = inlined_call_operand.hbm [shape: s8[256,256], index: 1, kind: input, shape index: {}]   ;;  %s1338_s2 = inlined_call_operand.vmem [shape: s32[1,256], index: 2, kind: input, shape index: {}]   ;;  %s1339_s3 = inlined_call_operand.vmem [shape: f32[1,256], index: 3, kind: input, shape index: {}]   ;;  %s1340_s4 = inlined_call_operand.hbm [shape: s8[32,256], index: 4, kind: output, shape index: {}]  }
   0x1   :  { %1351 = sst [smem:[#allocation22_spill]] %s1336_s0 }
   0x2   :  { %9 = vsyncpa [#allocation4], 0 }
   0x3   :  { %11 = vsyncpa [#allocation4 + $0x1], 0 }
   0x4   :  { %12 = vsyncpa [#allocation7], 0 }
   0x5   :  { %14 = vsyncpa [#allocation7 + $0x1], 0 }
   0x6   :  { %15 = vsyncpa [#allocation5], 0 }
   0x7   :  { %17 = vsyncpa [#allocation5 + $0x1], 0  ;;  %s1022_s15 = smov 0   ;;  %s1024_s16 = smov 0  }
   0x8   :  { %s1026_s17 = smov 0   ;;  %s1028_s18 = smov 0  }
   0x9   :  { %s1030_s19 = smov 0   ;;  %s1032_s20 = smov 0  }
   0xa   :  { %s1034_s21 = smov 0   ;;  %s1036_s22 = smov 0  }
   0xb   :  { %s1038_s23 = smov 0   ;;  %s1040_s24 = smov 0  }
   0xc   :  { %s1042_s25 = smov 0   ;;  %s1044_s26 = smov 0  }
   0xd   :  { %s1046_s27 = smov 0   ;;  %s1048_s28 = smov 0  }
   0xe LB: > { %1352 = sst [smem:[#allocation12_spill]] %s934_s15  ;;  %s1341_s29 = sadd.s32 4294967295, %s986_s28   ;;  %s986_s28 = sphi %s1048_s28, %s23_s28   ;;  %s982_s27 = sphi %s1046_s27, %s1400_s27   ;;  %s978_s26 = sphi %s1044_s26, %s1399_s26   ;;  %s974_s25 = sphi %s1042_s25, %s1398_s25   ;;  %s970_s24 = sphi %s1040_s24, %s1397_s24   ;;  %s966_s23 = sphi %s1038_s23, %s1385_s23   ;;  %s962_s22 = sphi %s1036_s22, %s1396_s22   ;;  %s958_s21 = sphi %s1034_s21, %s1395_s21   ;;  %s954_s20 = sphi %s1032_s20, %s1394_s20   ;;  %s950_s19 = sphi %s1030_s19, %s1393_s19   ;;  %s946_s18 = sphi %s1028_s18, %s1392_s18   ;;  %s942_s17 = sphi %s1026_s17, %s1382_s17   ;;  %s938_s16 = sphi %s1024_s16, %s1391_s16   ;;  %s934_s15 = sphi %s1022_s15, %s1390_s15  }
   0xf   : > { %1353 = sst [smem:[#allocation13_spill]] %s942_s17  ;;  %s35_s5 = sadd.s32 1, %s978_s26 }
  0x10   : > { %1354 = sst [smem:[#allocation14_spill]] %s966_s23  ;;  %s38_s6 = sadd.s32 1, %s982_s27 }
  0x11   : > { %1355 = sst [smem:[#allocation15_spill]] %s978_s26  ;;  %p36_p0 = scmp.ge.s32.totalorder %s35_s5, 2 }
  0x12   : > { %s51_s7 = sadd.s32 1, %s966_s23  ;;  %p58_p1 = scmp.ne.s32.totalorder %s966_s23, %s962_s22 }
  0x13   : > { %p59_p2 = scmp.eq.s32.totalorder %s986_s28, 0  ;;  %s1402_s5 = smov (%p36_p0, %s35_s5), 0 }
  0x14   : > { %1356 = sst [smem:[#allocation16_spill]] %s1402_s5  ;;  %s1404_s6 = smov (!%p36_p0, %s38_s6), %s982_s27 }
  0x15   : > { %s47_s8 = ssub.s32 %s978_s26, %s1402_s5  ;;  %p1105_p3 = por %p59_p2, %p58_p1 }
  0x16   : > { %p40_p4 = scmp.ge.s32.totalorder %s1404_s6, 2  ;;  %p49_p5 = scmp.eq.s32.totalorder %s47_s8, 0 }
  0x17   : > { %p64_p6 = scmp.ne.s32.totalorder %s962_s22, %s958_s21  ;;  %p1112_p7 = scmp.eq.s32.totalorder %s1341_s29, 0 }
  0x18   : > { %s1406_s6 = smov (%p40_p4, %s1404_s6), 0  ;;  %s79_s21 = sadd.s32 1, %s954_s20 }
  0x19   : > { %1359 = sst [smem:[#allocation17_spill]] %s1406_s6  ;;  %p1123_p8 = por %p1112_p7, %p64_p6 }
  0x1a   : > { %s1119_s11 = scalar_select %p49_p5, %s966_s23, %s51_s7  }
  0x1b   : > { %s75_s13 = ssub.s32 %s982_s27, %s1406_s6  ;;  %p86_p10 = scmp.ne.s32.totalorder %s954_s20, %s950_s19 }
  0x1c   : > { %1360 = sst [smem:[#allocation18_spill]] %s1119_s11  ;;  %s76_s14 = sor.u32 %s75_s13, %s47_s8 }
  0x1d   : > { %p77_p9 = scmp.eq.s32.totalorder %s76_s14, 0  ;;  %p92_p11 = scmp.ne.s32.totalorder %s950_s19, %s946_s18 }
  0x1e   : > { %p157_p12 = scmp.eq.s32.totalorder %s75_s13, 0  ;;  %p1139_p13 = por %p86_p10, %p59_p2 }
  0x1f   : > { %s1135_s7 = scalar_select %p77_p9, %s954_s20, %s79_s21  }
  0x20   : > { %p1145_p0 = por %p92_p11, %p1112_p7  ;;  %s159_s8 = sadd.s32 1, %s942_s17 }
  0x21   : > { %1362 = sst [smem:[#allocation19_spill]] %s1135_s7  ;;  %p169_p1 = scmp.ne.s32.totalorder %s942_s17, %s938_s16 }
  0x22   : > { %s1364_s29 = scalar_select %p1145_p0, 1, 0 }
  0x23   : > { %s1153_s14 = scalar_select %p157_p12, %s942_s17, %s159_s8  }
  0x24   : > { %s1366_s18 = sadd.s32 4294967295, %s986_s28   ;;  %p175_p5 = scmp.ne.s32.totalorder %s938_s16, %s934_s15 }
  0x25   : > { %1365 = sst [smem:[#allocation20_spill]] %s1153_s14  ;;  %p170_p4 = scmp.eq.s32.totalorder %s1366_s18, 3 }
  0x26   : > { %s1367_s13 = sadd.s32 4294967294, %s986_s28   ;;  %p662_p7 = scmp.lt.s32.totalorder %s986_s28, 4 }
  0x27   : > { %p176_p2 = scmp.eq.s32.totalorder %s1367_s13, 3  ;;  %p1161_p6 = por %p170_p4, %p169_p1 }
  0x28   : > { %s196_s6 = sand.u32 1, %s966_s23   ;;  %s584_s8 = sshll.u32 %s978_s26, 7 }
  0x29   : > { %s1368_s21 = scalar_select %p1161_p6, 1, 0 }
  0x2a   : > { %p1166_p9 = por %p176_p2, %p175_p5  ;;  %s583_s5 = sshll.u32 %s196_s6, 3 }
  0x2b   : > { %s1371_s0 = sld [smem:[#allocation22_spill]]  ;;  %s200_s14 = scalar_lea.vmem [#allocation3], %s583_s5 }
  0x2c   : > { %s1369_s10 = scalar_select %p1166_p9, 1, 0 }
  0x2d   : > { %s209_s17 = sshll.u32 %s200_s14, 4  ;;  %p1177_p10 = pnand %p662_p7, %p1105_p3  ;;  %s210_s17 = int_to_ptr.vmem [resolvable:$true] %s209_s17 }
  0x2e   : > { %1370 = sst [smem:[#allocation21_spill]] %s1369_s10  ;;  %s613_s15 = sshll.u32 %s978_s26, 3 }
  0x2f   : > { %p1184_p11 = pnand %p662_p7, %p1139_p13  ;;  %p589_p12 = scmp.ge.s32.totalorder %s986_s28, 1 }
  0x30   : > { %s197_s23 = scalar_lea.sflag [#allocation4], %s196_s6  ;;  %p784_p1 = pneg %p1177_p10 }
  0x31   : > { %s207_s18 = scalar_lea.hbm %s1371_s0, %s584_s8  ;;  %s795_s11 = scalar_lea.vmem %s210_s17, 128 }
  0x32   : > { %p796_p4 = scmp.ne.s32.totalorder %s210_s17, %s795_s11  ;;  %s988_s5 = smov [#allocation3]  }
  0x33   : > { %s800_s9 = sshll.u32 %s988_s5, 4  ;;  %s801_s9 = int_to_ptr.vmem [resolvable:$false] %s800_s9 }
  0x34   : > { %p798_p5 = pnand %p796_p4, %p784_p1  ;;  %s802_s7 = scalar_lea.vmem %s801_s9, 256 }
  0x35   : > { %p803_p3 = scmp.lt.s32.totalorder %s210_s17, %s801_s9  ;;  %p804_p9 = scmp.lt.s32.totalorder %s802_s7, %s795_s11 }
  0x36   : > { %p799_p2 = pneg %p798_p5 }
  0x37   : > { %p805_p6 = por %p804_p9, %p803_p3 }
  0x39   : > { %p806_p0 = pnand %p805_p6, %p799_p2 }
  0x3b   : > { %809 = shalt.err (!%p806_p0)
}
  0x3c   : > { %654 = dma.hbm_to_vmem [thread:$0]  (!%p1177_p10), %s207_s18, 128, %s210_s17, %s197_s23  }
  0x3d   : > { %p249_p13 = scmp.lt.s32.totalorder %s986_s28, 5  ;;  %s216_s30 = sand.u32 1, %s954_s20  }
  0x3e   : > { %s226_s6 = sadd.s32 %s982_s27, %s613_s15  ;;  %s585_s8 = sshll.u32 %s216_s30, 5 }
  0x3f   : > { %p1198_p7 = pnand %p589_p12, %p249_p13  ;;  %s588_s11 = sshll.u32 %s226_s6, 7 }
  0x40   : > { %s228_s13 = scalar_lea.hbm %s1337_s1, %s588_s11  ;;  %s220_s7 = scalar_lea.vmem [#allocation6], %s585_s8 }
  0x41   : > { %s229_s0 = sshll.u32 %s220_s7, 4  ;;  %s217_s26 = scalar_lea.sflag [#allocation7], %s216_s30  ;;  %s230_s0 = int_to_ptr.vmem [resolvable:$true] %s229_s0 }
  0x42   : > { %p812_p0 = pneg %p1184_p11  ;;  %s823_s17 = scalar_lea.vmem %s230_s0, 512 }
  0x43   : > { %p824_p6 = scmp.ne.s32.totalorder %s230_s0, %s823_s17  ;;  %s989_s15 = smov [#allocation6]  }
  0x44   : > { %s828_s23 = sshll.u32 %s989_s15, 4  ;;  %s829_s23 = int_to_ptr.vmem [resolvable:$false] %s828_s23 }
  0x45   : > { %p826_p9 = pnand %p824_p6, %p812_p0  ;;  %s830_s18 = scalar_lea.vmem %s829_s23, 1024 }
  0x46   : > { %p831_p12 = scmp.lt.s32.totalorder %s230_s0, %s829_s23  ;;  %p832_p1 = scmp.lt.s32.totalorder %s830_s18, %s823_s17 }
  0x47   : > { %p827_p10 = pneg %p826_p9 }
  0x48   : > { %p833_p4 = por %p832_p1, %p831_p12 }
  0x4a   : > { %p834_p5 = pnand %p833_p4, %p827_p10 }
  0x4c   : > { %837 = shalt.err (!%p834_p5)
}
  0x4d   : > { %s990_s6 = smov 256   ;;  %s991_s8 = smov 128  }
  0x4e   : > { %s992_s11 = smov 8   ;;  %253 = sbr.rel (%p1198_p7) target bundleno = 356 (0x164), region = 36 }
  0x4f   : > { %657 = dma.hbm_to_vmem [thread:$0]  (!%p1184_p11), %s228_s13, 512, %s230_s0, %s217_s26, %s990_s6, %s991_s8, %s992_s11  }
  0x50   : > { %s255_s30 = sand.u32 (!%p1198_p7), 1, %s962_s22  }
  0x51   : > { %s1212_s5 = sshll.u32 (!%p1198_p7), %s255_s30, 3  ;;  %s256_s9 = scalar_lea.sflag (!%p1198_p7), [#allocation4], %s255_s30 }
  0x52   : > { %s259_s7 = scalar_lea.vmem (!%p1198_p7), [#allocation3], %s1212_s5 }
  0x53   : > { %921 = dma.done.wait (%p1123_p8), %s256_s9, 128  }
  0x54   : > { %923 = vsyncadd (%p1123_p8), %s256_s9, 4294967168  ;;  %s264_s10 = sand.u32 1, %s950_s19   ;;  %p1375_p11 = scmp.ne.s32.totalorder %s1364_s29, 0 }
  0x55   : > { %s591_s0 = sshll.u32 %s264_s10, 5  ;;  %s265_s26 = scalar_lea.sflag [#allocation7], %s264_s10 }
  0x56   : > { %s1220_s14 = scalar_lea.vmem [#allocation6], %s591_s0 }
  0x57   : > { %925 = dma.done.wait (%p1375_p11), %s265_s26, 512  }
  0x58   : > { %927 = vsyncadd (%p1375_p11), %s265_s26, 4294966784  ;;  %s301_s13 = sand.u32 1, %s938_s16   ;;  %p305_p2 = scmp.lt.s32.totalorder %s974_s25, 1 }
  0x59   : > { %s1230_s12 = sshll.u32 %s301_s13, 3  ;;  %p593_p8 = scmp.ne.s32.totalorder %s970_s24, 0 }
  0x5a   : > { %s1233_s17 = scalar_select %p305_p2, %s974_s25, 1 }
  0x5b   : > { %s303_s11 = scalar_lea.vmem [#allocation8], %s1230_s12  ;;  %315 = sbr.rel (%p593_p8) target bundleno = 99 (0x63), region = 48 }
  0x5c   : > { %s307_s18 = scalar_lea.vmem %s1338_s2, %s1233_s17  ;;  %s310_s8 = scalar_lea.vmem %s1339_s3, %s1233_s17 }
  0x60   : > { %v993_v0 = vmov 0  }
  0x61   : > { %316 = vst [vmem:[#allocation2 + $0x10] sm:$0xff] %v993_v0  ;;  %317 = vst [vmem:[#allocation2] sm:$0xff] %v993_v0 }
  0x62   : > { %318 = vst [vmem:[#allocation2 + $0x18] sm:$0xff] %v993_v0  ;;  %319 = vst [vmem:[#allocation2 + $0x8] sm:$0xff] %v993_v0 }
  0x63 PF: > { %v328_v1 = vld [vmem:[%s1220_s14 + $0x18] sm:$0xff]  ;;  %v994_v2 = vmov 0.0   ;;  %vm995_vm0 = vmmov 0   ;;  %v327_v3 = vld [vmem:[%s1220_s14 + $0x10] sm:$0xff]  ;;  %v326_v4 = vld [vmem:[%s1220_s14 + $0x8] sm:$0xff]  ;;  %p594_p3 = scmp.ne.s32.totalorder %s970_s24, 1 }
  0x64   : > { %619 = vmatprep.subr.s8.mxu0 %v994_v2  ;;  %627 = vmatprep.mubr.msk.s8.mxu0 %vm995_vm0, %v994_v2  ;;  %v325_v5 = vld [vmem:[%s1220_s14] sm:$0xff]  ;;  %v324_v6 = vld [vmem:[%s259_s7] sm:$0xff] }
  0x65   : > { %620 = vmatpush3.s8.msra.mxu0 %v328_v1 }
  0x66   : > { %621 = vmatprep.subr.s8.mxu0 %v994_v2 }
  0x68   : > { %v320_v7 = vld [vmem:[#allocation2 + $0x10] sm:$0xff]  ;;  %v321_v9 = vld [vmem:[#allocation2] sm:$0xff] }
  0x69   : > { %622 = vmatpush3.s8.msra.mxu0 %v327_v3  ;;  %v322_v13 = vld [vmem:[#allocation2 + $0x18] sm:$0xff]  ;;  %v323_v17 = vld [vmem:[#allocation2 + $0x8] sm:$0xff] }
  0x6a   : > { %623 = vmatprep.subr.s8.mxu0 %v994_v2 }
  0x6d   : > { %624 = vmatpush3.s8.msra.mxu0 %v326_v4 }
  0x6e   : > { %625 = vmatprep.subr.s8.mxu0 %v994_v2 }
  0x71   : > { %626 = vmatpush3.s8.msra.mxu0 %v325_v5 }
  0x74   : > { %628 = vmatmul.mubr.s8.vlgmr.msra.gmra.mxu0 %v324_v6 }
 0x12a   : > { %v347_v8 = vpop.s32.mrf.mxu0 }
 0x12b   : > { %v360_v10 = vadd.s32 %v347_v8, %v320_v7  ;;  %v629_v11 = vpop.s32.mrf.mxu0 }
 0x12c   : > { %v350_v12 = vpop.s32.mrf.mxu0 }
 0x12d   : > { %364 = vst [vmem:[#allocation2 + $0x10] sm:$0xff] %v360_v10  ;;  %v361_v14 = vadd.s32 %v350_v12, %v321_v9  ;;  %v630_v15 = vpop.s32.mrf.mxu0 }
 0x12e   : > { %v353_v16 = vpop.s32.mrf.mxu0 }
 0x12f   : > { %365 = vst [vmem:[#allocation2] sm:$0xff] %v361_v14  ;;  %v362_v18 = vadd.s32 %v353_v16, %v322_v13  ;;  %v631_v19 = vpop.s32.mrf.mxu0  ;;  %371 = sbr.rel (%p594_p3) target bundleno = 332 (0x14c), region = 52 }
 0x130   : > { %v356_v20 = vpop.s32.mrf.mxu0 }
 0x131   : > { %366 = vst [vmem:[#allocation2 + $0x18] sm:$0xff] %v362_v18  ;;  %v363_v21 = vadd.s32 %v356_v20, %v323_v17  ;;  %v632_v22 = vpop.s32.mrf.mxu0 }
 0x133   : > { %367 = vst [vmem:[#allocation2 + $0x8] sm:$0xff] %v363_v21 }
 0x134   : > { %v372_v23 = vld [vmem:[#allocation2 + $0x10] sm:$0xff]  ;;  %v595_v27 = vld [vmem:[%s307_s18] ss:$0 sm:$0xff] }
 0x135   : > { %v381_v28 = vadd.s32 %v595_v27, %v372_v23  ;;  %v596_v32 = vld [vmem:[%s310_s8] ss:$0 sm:$0xff] }
 0x136   : > { %v373_v24 = vld [vmem:[#allocation2] sm:$0xff] }
 0x137   : > { %v382_v29 = vadd.s32 %v595_v27, %v373_v24  ;;  %v385_v33 = vcvt.s32.f32 %v381_v28 }
 0x138   : > { %v374_v25 = vld [vmem:[#allocation2 + $0x18] sm:$0xff] }
 0x139   : > { %v383_v30 = vadd.s32 %v595_v27, %v374_v25  ;;  %v386_v34 = vcvt.s32.f32 %v382_v29  ;;  %v396_v37 = vmul.f32 %v596_v32, %v385_v33 }
 0x13a   : > { %v375_v26 = vld [vmem:[#allocation2 + $0x8] sm:$0xff] }
 0x13b   : > { %v384_v31 = vadd.s32 %v595_v27, %v375_v26  ;;  %v387_v35 = vcvt.s32.f32 %v383_v30  ;;  %v397_v38 = vmul.f32 %v596_v32, %v386_v34  ;;  %v400_v41 = vadd.f32 -5.0, %v396_v37 }
 0x13d   : > { %v388_v36 = vcvt.s32.f32 %v384_v31  ;;  %v398_v39 = vmul.f32 %v596_v32, %v387_v35  ;;  %v401_v42 = vadd.f32 -5.0, %v397_v38  ;;  %v601_v45 = vclampa-f32 %v400_v41, -128, 127 }
 0x13f   : > { %v399_v40 = vmul.f32 %v596_v32, %v388_v36  ;;  %v402_v43 = vadd.f32 -5.0, %v398_v39  ;;  %v603_v46 = vclampa-f32 %v401_v42, -128, 127  ;;  %v635_v49 = vcvt.f32.s32 %v601_v45 }
 0x141   : > { %v403_v44 = vadd.f32 -5.0, %v399_v40  ;;  %v605_v47 = vclampa-f32 %v402_v43, -128, 127  ;;  %v638_v50 = vcvt.f32.s32 %v603_v46 }
 0x143   : > { %v607_v48 = vclampa-f32 %v403_v44, -128, 127  ;;  %v641_v51 = vcvt.f32.s32 %v605_v47  ;;  %v428_v53 = vpack.c.b16 %v638_v50, %v635_v49 }
 0x145   : > { %v644_v52 = vcvt.f32.s32 %v607_v48 }
 0x147   : > { %v429_v54 = vpack.c.b16 %v644_v52, %v641_v51 }
 0x149   : > { %v430_v55 = vpack.c.b8 %v429_v54, %v428_v53 }
 0x14b   : > { %431 = vst [vmem:[%s303_s11] sm:$0xff] %v430_v55 }
 0x14c PF: > { %s610_s24 = sshll.u32 %s974_s25, 7  ;;  %s448_s14 = sshll.u32 %s303_s11, 4  ;;  %s449_s14 = int_to_ptr.vmem [resolvable:$true] %s448_s14 }
 0x14d   : > { %s446_s26 = scalar_lea.hbm %s1340_s4, %s610_s24  ;;  %s433_s17 = scalar_lea.sflag [#allocation5], %s301_s13 }
 0x14e   : > { %s838_s15 = scalar_lea.vmem %s449_s14, 128  ;;  %p1376_p7 = scmp.ne.s32.totalorder %s1368_s21, 0 }
 0x14f   : > { %p839_p13 = scmp.ne.s32.totalorder %s449_s14, %s838_s15  ;;  %s996_s23 = smov [#allocation8]  }
 0x150   : > { %s842_s18 = sshll.u32 %s996_s23, 4  ;;  %s843_s18 = int_to_ptr.vmem [resolvable:$false] %s842_s18 }
 0x151   : > { %p840_p0 = pnand %p839_p13, %p1376_p7  ;;  %s844_s29 = scalar_lea.vmem %s843_s18, 256 }
 0x152   : > { %p845_p9 = scmp.lt.s32.totalorder %s449_s14, %s843_s18  ;;  %p846_p10 = scmp.lt.s32.totalorder %s844_s29, %s838_s15 }
 0x153   : > { %p841_p6 = pneg %p840_p0 }
 0x154   : > { %p847_p12 = por %p846_p10, %p845_p9 }
 0x156   : > { %p848_p1 = pnand %p847_p12, %p841_p6 }
 0x158   : > { %851 = shalt.err (!%p848_p1)
}
 0x159   : > { %s852_s25 = scalar_lea.hbm %s446_s26, 128  ;;  %s856_s6 = scalar_lea.hbm %s1340_s4, 256 }
 0x15a   : > { %p853_p4 = scmp.ne.s32.totalorder %s446_s26, %s852_s25  ;;  %p857_p2 = scmp.lt.s32.totalorder %s446_s26, %s1340_s4 }
 0x15b   : > { %p858_p8 = scmp.lt.s32.totalorder %s856_s6, %s852_s25 }
 0x15c   : > { %p854_p5 = pnand %p853_p4, %p1376_p7 }
 0x15d   : > { %p859_p3 = por %p858_p8, %p857_p2 }
 0x15e   : > { %p855_p11 = pneg %p854_p5 }
 0x160   : > { %p860_p13 = pnand %p859_p3, %p855_p11 }
 0x162   : > { %863 = shalt.err (!%p860_p13)
}
 0x163   : > { %649 = dma.vmem_to_hbm [thread:$0]  (%p1376_p7), %s449_s14, 128, %s446_s26, %s433_s17  }
 0x164 PF: > { %s1377_s30 = sld [smem:[#allocation12_spill]]  ;;  %p663_p0 = scmp.ge.s32.totalorder %s986_s28, 2 }
 0x165   : > { %s1378_s5 = sld [smem:[#allocation21_spill]] }
 0x16a   : > { %s460_s9 = sand.u32 1, %s1377_s30  }
 0x16b   : > { %p1379_p6 = scmp.ne.s32.totalorder %s1378_s5, 0  ;;  %s461_s7 = scalar_lea.sflag [#allocation5], %s460_s9 }
 0x16d   : > { %p659_p9 = pnand %p663_p0, %p1379_p6 }
 0x16f   : > { %p660_p10 = pneg %p659_p9 }
 0x171   : > { %929 = dma.done.wait (%p660_p10), %s461_s7, 128  }
 0x172   : > { %931 = vsyncadd (%p660_p10), %s461_s7, 4294967168  ;;  %s23_s28 = sadd.s32 1, %s986_s28   ;;  %s1381_s21 = sld [smem:[#allocation13_spill]] }
 0x173   : > { %p1289_p12 = scmp.ge.s32.totalorder %s23_s28, 6   ;;  %s1382_s17 = sld [smem:[#allocation20_spill]] }
 0x174   : > { %s1383_s10 = sld [smem:[#allocation19_spill]]  ;;  %s1390_s15 = smov %s938_s16 }
 0x175   : > { %s1384_s0 = sld [smem:[#allocation14_spill]]  ;;  %s1392_s18 = smov %s950_s19 }
 0x176   : > { %s1385_s23 = sld [smem:[#allocation18_spill]]  ;;  %s1393_s19 = smov %s954_s20 }
 0x177   : > { %s1386_s26 = sld [smem:[#allocation15_spill]]  ;;  %s1398_s25 = smov %s982_s27 }
 0x178   : > { %s1387_s14 = sld [smem:[#allocation16_spill]]  ;;  %s1391_s16 = smov %s1381_s21 }
 0x179   : > { %s1388_s29 = sld [smem:[#allocation17_spill]]  ;;  %s1395_s21 = smov %s962_s22 }
 0x17a   : > { %s1394_s20 = smov %s1383_s10 }
 0x17b   : > { %s1396_s22 = smov %s1384_s0  ;;  %22 = sbr.rel (!%p1289_p12) target bundleno = 14 (0xe), region = 108 }
 0x17d   : > { %s1397_s24 = smov %s1386_s26 }
 0x17e   : > { %s1399_s26 = smov %s1387_s14 }
 0x17f   : > { %s1400_s27 = smov %s1388_s29 }
 0x180   :  { %466 = vsyncpa [#allocation4], 1 }
 0x181   :  { %468 = vsyncpa [#allocation4 + $0x1], 1 }
 0x182   :  { %469 = vsyncpa [#allocation7], 1 }
 0x183   :  { %471 = vsyncpa [#allocation7 + $0x1], 1 }
 0x184   :  { %472 = vsyncpa [#allocation5], 1 }
 0x185   :  { %474 = vsyncpa [#allocation5 + $0x1], 1 }

</bundles_post_ra>
